<compile_context>
chip_gen: v7x
topology: tpu7x:2x2x1
jax: 0.10.0
libtpu: 0.0.40
codegen_flags: <defaults>
</compile_context>

<pallas_src>
import functools

import jax
import jax.numpy as jnp
from jax.experimental import pallas as pl
from jax.experimental.pallas import tpu as pltpu


# --------------------------------------------------------------------------- #
# small helpers
# --------------------------------------------------------------------------- #
def calc_same_padding(kernel_size):
    pad = kernel_size // 2
    return (pad, pad - (kernel_size + 1) % 2)


def _round_up(x, m):
    return (x + m - 1) // m * m


def _layer_norm(x, gamma, beta, eps=1e-5):
    mean = jnp.mean(x, axis=-1, keepdims=True)
    var = jnp.mean(jnp.square(x - mean), axis=-1, keepdims=True)
    return (x - mean) * jax.lax.rsqrt(var + eps) * gamma + beta


def _const_spec(arr):
    # Full-array block, constant index map: fetched once and kept resident.
    nd = arr.ndim
    return pl.BlockSpec(arr.shape, lambda *_, _nd=nd: (0,) * _nd)


@functools.lru_cache(maxsize=None)
def _vmem_budget_bytes():
    # Per-generation scoped-VMEM budget: 75% of physical VMEM (v5e/v6e 128 MiB,
    # v7x 64 MiB).  Conservative 48 MiB fallback if the query is unavailable.
    budget = 48 << 20
    try:
        info = pltpu.get_tpu_info()
        cap = getattr(info, "vmem_capacity_bytes", None)
        if cap:
            budget = int(cap) * 3 // 4
    except Exception:
        pass
    return budget


def _compiler_params(block_bytes, semantics):
    vmem = int(min(max(4 * block_bytes + (8 << 20), 16 << 20), _vmem_budget_bytes()))
    return pltpu.CompilerParams(dimension_semantics=semantics,
                                vmem_limit_bytes=vmem)


def _param_bytes(args):
    return sum(int(a.size) * a.dtype.itemsize for a in args)


# --------------------------------------------------------------------------- #
# FF1 block:  out = x + 0.5 * FF(LN(x))
# --------------------------------------------------------------------------- #
def _ff_kernel(x_ref, g_ref, b_ref, w1_ref, b1_ref, w2_ref, b2_ref, o_ref, *,
               mxu_dtype):
    x = x_ref[0].astype(jnp.float32)                                   # (TN, dim)
    y = _layer_norm(x, g_ref[...], b_ref[...])
    u = jnp.dot(y.astype(mxu_dtype), w1_ref[...],
                preferred_element_type=jnp.float32) + b1_ref[...]
    u = u * jax.nn.sigmoid(u)                                          # Swish
    v = jnp.dot(u.astype(mxu_dtype), w2_ref[...],
                preferred_element_type=jnp.float32) + b2_ref[...]
    o_ref[0] = (x + 0.5 * v).astype(o_ref.dtype)


def _ff1_block(x, p, *, tile, mxu_dtype, out_dtype):
    B, n_pad, dim = x.shape
    grid = (B, n_pad // tile)
    args = (p["ln_g"], p["ln_b"], p["w1t"], p["b1"], p["w2t"], p["b2"])
    in_specs = [pl.BlockSpec((1, tile, dim), lambda b, j, *_: (b, j, 0))]
    in_specs += [_const_spec(a) for a in args]
    hidden = p["w1t"].shape[1]
    block_bytes = 4 * tile * (4 * dim + 2 * hidden) + 2 * _param_bytes(args)
    return pl.pallas_call(
        functools.partial(_ff_kernel, mxu_dtype=mxu_dtype),
        out_shape=jax.ShapeDtypeStruct((B, n_pad, dim), out_dtype),
        grid=grid,
        in_specs=in_specs,
        out_specs=pl.BlockSpec((1, tile, dim), lambda b, j, *_: (b, j, 0)),
        compiler_params=_compiler_params(block_bytes, ("parallel", "parallel")),
    )(x, *args)


# --------------------------------------------------------------------------- #
# Attention block:  out = x + to_out(softmax(q k^T * scale) v)
# K/V of the whole (padded) sequence are projected ONCE per batch (one fused
# wkv matmul) into VMEM scratch; every query tile slices itself out of the
# resident full-seq block, does one fused Q projection, per-head softmax/PV,
# and one fused output projection.  Keys beyond n_valid are masked out.
# --------------------------------------------------------------------------- #
def _attn_kernel(nvalid_ref, x_ref, g_ref, b_ref, wq_ref, wkv_ref, wo_ref,
                 bo_ref, o_ref, k_scr, v_scr, *, heads, dim_head, tile,
                 mxu_dtype):
    j = pl.program_id(1)
    n_keys = x_ref.shape[1]
    hd_all = heads * dim_head

    @pl.when(j == 0)                              # once per batch: LN + fused K/V
    def _():
        xf = x_ref[0].astype(jnp.float32)                              # (Np, dim)
        ykv = _layer_norm(xf, g_ref[...], b_ref[...]).astype(mxu_dtype)
        kv = jnp.dot(ykv, wkv_ref[...], preferred_element_type=jnp.float32)
        for h in range(heads):                                         # static, per batch
            k_scr[h] = kv[:, h * dim_head:(h + 1) * dim_head].astype(mxu_dtype)
            v_scr[h] = kv[:, hd_all + h * dim_head:
                          hd_all + (h + 1) * dim_head].astype(mxu_dtype)

    q_start = pl.multiple_of(j * tile, tile)
    xq = x_ref[0, pl.ds(q_start, tile), :].astype(jnp.float32)         # (TQ, dim)
    yq = _layer_norm(xq, g_ref[...], b_ref[...]).astype(mxu_dtype)
    q = jnp.dot(yq, wq_ref[...], preferred_element_type=jnp.float32)   # scale folded in

    nv = nvalid_ref[0]
    key_ids = jax.lax.broadcasted_iota(jnp.int32, (1, n_keys), 1)
    key_bias = jnp.where(key_ids < nv, 0.0, -1e30)                     # additive mask

    approx = mxu_dtype != jnp.float32
    outs = []
    for h in range(heads):                      # per-head only for score/softmax/PV
        q_h = q[:, h * dim_head:(h + 1) * dim_head].astype(mxu_dtype)
        s = jax.lax.dot_general(q_h, k_scr[h], (((1,), (1,)), ((), ())),
                                preferred_element_type=jnp.float32)
        s = s + key_bias
        s = s - jnp.max(s, axis=-1, keepdims=True)
        p = jnp.exp(s)
        p = p * pl.reciprocal(jnp.sum(p, axis=-1, keepdims=True), approx=approx)
        o_h = jnp.dot(p.astype(mxu_dtype), v_scr[h],
                      preferred_element_type=jnp.float32)
        outs.append(o_h.astype(mxu_dtype))
    o_cat = jnp.concatenate(outs, axis=-1)                             # (TQ, H*Dh)
    out = xq + jnp.dot(o_cat, wo_ref[...],
                       preferred_element_type=jnp.float32) + bo_ref[...]
    o_ref[0] = out.astype(o_ref.dtype)


def _attention_block(x, p, *, tile, n_valid, heads, mxu_dtype, out_dtype):
    B, n_pad, dim = x.shape
    hd_all = p["wqt"].shape[1]
    dim_head = hd_all // heads
    grid = (B, n_pad // tile)
    args = (p["ln_g"], p["ln_b"], p["wqt"], p["wkvt"], p["wot"], p["bo"])

    in_specs = [pl.BlockSpec((1, n_pad, dim), lambda b, j, *_: (b, 0, 0))]
    in_specs += [_const_spec(a) for a in args]
    kern = functools.partial(_attn_kernel, heads=heads, dim_head=dim_head,
                             tile=tile, mxu_dtype=mxu_dtype)
    itb = 2 if mxu_dtype == jnp.bfloat16 else 4
    block_bytes = (x.dtype.itemsize * n_pad * dim * 2
                   + 2 * heads * n_pad * dim_head * itb
                   + 4 * tile * (2 * n_pad + dim + 2 * hd_all)
                   + 2 * _param_bytes(args))
    return pl.pallas_call(
        kern,
        out_shape=jax.ShapeDtypeStruct((B, n_pad, dim), out_dtype),
        grid_spec=pltpu.PrefetchScalarGridSpec(
            num_scalar_prefetch=1, grid=grid,
            in_specs=in_specs,
            out_specs=pl.BlockSpec((1, tile, dim), lambda b, j, *_: (b, j, 0)),
            scratch_shapes=[pltpu.VMEM((heads, n_pad, dim_head), mxu_dtype),
                            pltpu.VMEM((heads, n_pad, dim_head), mxu_dtype)]),
        compiler_params=_compiler_params(block_bytes, ("parallel", "arbitrary")),
    )(n_valid, x, *args)


# --------------------------------------------------------------------------- #
# Fused ConformerConvModule + FF2 + post-LayerNorm (one pallas_call):
#   conv:  LN -> 1x1 conv (2*inner) -> GLU -> depthwise conv(K, same pad)
#          -> Swish -> ChanLayerNorm -> 1x1 conv (dim) -> + x
#   then:  x + 0.5*FF2(LN(x)); then post-LayerNorm.
# The depthwise conv gets its halo from two extra 8-row-aligned (HALO, dim)
# blocks of x; GLU output is zero-masked outside the true sequence so the
# conv's zero-padding semantics hold at tile/batch edges.
# --------------------------------------------------------------------------- #
def _conv_ff2_post_kernel(nvalid_ref, xm_ref, xl_ref, xr_ref,
                          cg_ref, cb_ref, cw1_ref, cb1_ref, cwd_ref, cbd_ref,
                          cgamma_ref, cw2_ref, cb2_ref,
                          fg_ref, fb_ref, fw1_ref, fb1_ref, fw2_ref, fb2_ref,
                          pg_ref, pb_ref, o_ref, *,
                          inner, kernel_size, pad_l, halo, tile,
                          mxu_dtype, tap_dtype):
    x_m = xm_ref[0].astype(jnp.float32)                                # (TN, dim)
    x_l = xl_ref[0].astype(jnp.float32)                                # (HALO, dim)
    x_r = xr_ref[0].astype(jnp.float32)                                # (HALO, dim)
    x_cat = jnp.concatenate([x_l, x_m, x_r], axis=0)                   # (L, dim)
    length = 2 * halo + tile
    nv = nvalid_ref[0]

    # 1) LayerNorm + pointwise conv1 (MXU) + GLU, recomputed on the halo rows.
    y = _layer_norm(x_cat, cg_ref[...], cb_ref[...])
    z = jnp.dot(y.astype(mxu_dtype), cw1_ref[...],
                preferred_element_type=jnp.float32) + cb1_ref[...]
    hbuf = z[:, :inner] * jax.nn.sigmoid(z[:, inner:])                 # GLU, (L, inner)

    # Zero hbuf outside the real sequence (depthwise-conv zero padding; keeps
    # sequence tiles and batches independent).
    row0 = pl.program_id(1) * tile - halo
    g_row = row0 + jax.lax.broadcasted_iota(jnp.int32, (length, 1), 0)
    valid = ((g_row >= 0) & (g_row < nv)).astype(jnp.float32)
    hbuf = hbuf * valid

    # 2) Depthwise conv.  Taps grouped by sublane phase (k -> 8*q + r): one XLU
    #    roll per phase (f32 layout), then only 8-row-aligned slices; the tap
    #    multiply-accumulate runs in tap_dtype (bf16 on v6e/v7x fast path).
    wd = cwd_ref[...].astype(tap_dtype)                                # (K, inner)
    off0 = halo - pad_l
    acc = None
    for r in range(8):
        taps = [k for k in range(kernel_size) if (off0 + k) % 8 == r]
        if not taps:
            continue
        h_r = hbuf if r == 0 else pltpu.roll(hbuf, shift=length - r, axis=0)
        h_r = h_r.astype(tap_dtype)
        for k in taps:
            start = off0 + k - r                                       # multiple of 8
            term = jax.lax.slice_in_dim(h_r, start, start + tile, axis=0) \
                   * wd[k][None, :]
            acc = term if acc is None else acc + term
    dw = acc.astype(jnp.float32) + cbd_ref[...]                        # bias folded once

    # 3) Swish
    sw = dw * jax.nn.sigmoid(dw)

    # 4) ChanLayerNorm (gamma only, clamped eps = 1e-6 for f32)
    c_mean = jnp.mean(sw, axis=-1, keepdims=True)
    c_var = jnp.mean(jnp.square(sw - c_mean), axis=-1, keepdims=True)
    cl = (sw - c_mean) * jax.lax.rsqrt(jnp.maximum(c_var, 1e-6)) * cgamma_ref[...]

    # 5) pointwise conv2 (MXU) + residual.  Dropout(p=0) == identity.
    conv_out = jnp.dot(cl.astype(mxu_dtype), cw2_ref[...],
                       preferred_element_type=jnp.float32) + cb2_ref[...]
    x1 = x_m + conv_out

    # 6) FF2 (0.5 scaled) + residual, tile-local.
    y2 = _layer_norm(x1, fg_ref[...], fb_ref[...])
    u = jnp.dot(y2.astype(mxu_dtype), fw1_ref[...],
                preferred_element_type=jnp.float32) + fb1_ref[...]
    u = u * jax.nn.sigmoid(u)
    v2 = jnp.dot(u.astype(mxu_dtype), fw2_ref[...],
                 preferred_element_type=jnp.float32) + fb2_ref[...]
    x2 = x1 + 0.5 * v2

    # 7) post LayerNorm (fused)
    o_ref[0] = _layer_norm(x2, pg_ref[...], pb_ref[...]).astype(o_ref.dtype)


def _conv_ff2_post_block(x, pconv, pff2, ppost, *, tile, halo, n_valid,
                         kernel_size, causal, mxu_dtype, tap_dtype, out_dtype):
    B, n_pad, dim = x.shape
    inner = pconv["gamma"].shape[1]
    hidden = pff2["w1t"].shape[1]
    pad_l, _ = (kernel_size - 1, 0) if causal else calc_same_padding(kernel_size)
    grid = (B, n_pad // tile)
    c = tile // halo
    n_halo_blocks = n_pad // halo

    args = (pconv["ln_g"], pconv["ln_b"], pconv["w1t"], pconv["b1"], pconv["wdt"],
            pconv["bd"], pconv["gamma"], pconv["w2t"], pconv["b2"],
            pff2["ln_g"], pff2["ln_b"], pff2["w1t"], pff2["b1"], pff2["w2t"],
            pff2["b2"], ppost["ln_g"], ppost["ln_b"])
    in_specs = [
        pl.BlockSpec((1, tile, dim), lambda b, j, *_: (b, j, 0)),
        # left / right halo blocks (clamped at the sequence edges; the kernel
        # zero-masks whatever falls outside the true sequence).
        pl.BlockSpec((1, halo, dim),
                     lambda b, j, *_, _c=c: (b, jnp.maximum(j * _c - 1, 0), 0)),
        pl.BlockSpec((1, halo, dim),
                     lambda b, j, *_, _c=c, _n=n_halo_blocks:
                     (b, jnp.minimum((j + 1) * _c, _n - 1), 0)),
    ]
    in_specs += [_const_spec(a) for a in args]
    kern = functools.partial(_conv_ff2_post_kernel, inner=inner,
                             kernel_size=kernel_size, pad_l=pad_l, halo=halo,
                             tile=tile, mxu_dtype=mxu_dtype, tap_dtype=tap_dtype)
    length = tile + 2 * halo
    block_bytes = (4 * length * dim * 2 + 4 * length * 2 * inner * 3
                   + 4 * tile * (3 * dim + hidden) + 2 * _param_bytes(args))
    return pl.pallas_call(
        kern,
        out_shape=jax.ShapeDtypeStruct((B, n_pad, dim), out_dtype),
        grid_spec=pltpu.PrefetchScalarGridSpec(
            num_scalar_prefetch=1, grid=grid,
            in_specs=in_specs,
            out_specs=pl.BlockSpec((1, tile, dim), lambda b, j, *_: (b, j, 0))),
        compiler_params=_compiler_params(block_bytes, ("parallel", "parallel")),
    )(n_valid, x, x, x, *args)


# --------------------------------------------------------------------------- #
# Parameter preparation (one-time, outside the hot path): transpose into
# matmul-friendly layouts, fuse attention weight slabs, fold the softmax scale
# into wq, cast MXU operands.
# --------------------------------------------------------------------------- #
def prepare_params(p, *, heads, mxu_dtype=jnp.bfloat16):
    f32 = jnp.float32

    def row(v):
        return v.reshape(1, -1).astype(f32)

    def ff(q):
        return dict(ln_g=row(q["ln_w"]), ln_b=row(q["ln_b"]),
                    w1t=q["w1"].T.astype(mxu_dtype), b1=row(q["b1"]),
                    w2t=q["w2"].T.astype(mxu_dtype), b2=row(q["b2"]))

    a = p["attn"]
    inner_attn = a["wq"].shape[0]
    dim_head = inner_attn // heads
    scale = dim_head ** -0.5
    attn = dict(ln_g=row(a["ln_w"]), ln_b=row(a["ln_b"]),
                wqt=(a["wq"].T * scale).astype(mxu_dtype),     # (dim, H*Dh), scale folded
                wkvt=a["wkv"].T.astype(mxu_dtype),             # (dim, 2*H*Dh) fused slab
                wot=a["wo"].T.astype(mxu_dtype),               # (H*Dh, dim)   fused slab
                bo=row(a["bo"]))

    c = p["conv"]
    conv = dict(ln_g=row(c["ln_w"]), ln_b=row(c["ln_b"]),
                w1t=c["w1"].T.astype(mxu_dtype), b1=row(c["b1"]),
                wdt=c["wd"].T.astype(f32), bd=row(c["bd"]),
                gamma=row(c["gamma"]),
                w2t=c["w2"].T.astype(mxu_dtype), b2=row(c["b2"]))

    return dict(heads=heads, ff1=ff(p["ff1"]), attn=attn, conv=conv,
                ff2=ff(p["ff2"]),
                post=dict(ln_g=row(p["post"]["ln_w"]), ln_b=row(p["post"]["ln_b"])))


# --------------------------------------------------------------------------- #
# Full ConformerBlock forward: 3 pallas_calls (FF1, Attention, Conv+FF2+postLN)
# --------------------------------------------------------------------------- #
def conformer_block(x, prep, *, kernel_size=31, causal=False, tile_target=512,
                    seq_len=None, interstage_dtype=None, conv_tap_dtype=None):
    B, N, dim = x.shape
    heads = prep["heads"]
    mxu_dtype = prep["ff1"]["w1t"].dtype
    inter_dt = interstage_dtype
    if inter_dt is None:  # bf16 inter-stage activations on the bf16 fast path
        inter_dt = jnp.bfloat16 if mxu_dtype == jnp.bfloat16 else x.dtype
    tap_dt = conv_tap_dtype if conv_tap_dtype is not None else mxu_dtype  # v5e: pass f32

    pad_l, pad_r = (kernel_size - 1, 0) if causal else calc_same_padding(kernel_size)
    halo = max(8, _round_up(max(pad_l, pad_r), 8))
    tile = _round_up(min(tile_target, _round_up(N, halo)), halo)
    n_pad = _round_up(N, tile)
    n_valid = jnp.asarray([N if seq_len is None else seq_len], jnp.int32)

    xp = x if n_pad == N else jnp.pad(x, ((0, 0), (0, n_pad - N), (0, 0)))

    xp = _ff1_block(xp, prep["ff1"], tile=tile, mxu_dtype=mxu_dtype,
                    out_dtype=inter_dt)
    xp = _attention_block(xp, prep["attn"], tile=tile, n_valid=n_valid,
                          heads=heads, mxu_dtype=mxu_dtype, out_dtype=inter_dt)
    xp = _conv_ff2_post_block(xp, prep["conv"], prep["ff2"], prep["post"],
                              tile=tile, halo=halo, n_valid=n_valid,
                              kernel_size=kernel_size, causal=causal,
                              mxu_dtype=mxu_dtype, tap_dtype=tap_dt,
                              out_dtype=x.dtype)
    return xp if n_pad == N else xp[:, :N, :]


# --------------------------------------------------------------------------- #
# Pure-JAX reference (mirrors the PyTorch module, f32 everywhere)
# --------------------------------------------------------------------------- #
def reference_block(x, p, *, heads, kernel_size, causal):
    def ln(v, g, b, eps=1e-5):
        m = v.mean(-1, keepdims=True)
        var = ((v - m) ** 2).mean(-1, keepdims=True)
        return (v - m) * jax.lax.rsqrt(var + eps) * g + b

    def ff(v, q):
        h = ln(v, q["ln_w"], q["ln_b"])
        u = h @ q["w1"].T + q["b1"]
        u = u * jax.nn.sigmoid(u)
        return u @ q["w2"].T + q["b2"]

    B, N, dim = x.shape
    x = x + 0.5 * ff(x, p["ff1"])

    a = p["attn"]
    dh = a["wq"].shape[0] // heads
    h = ln(x, a["ln_w"], a["ln_b"])
    q = h @ a["wq"].T
    kv = h @ a["wkv"].T
    k, v = kv[..., :heads * dh], kv[..., heads * dh:]

    def split(t):
        return t.reshape(B, N, heads, dh).transpose(0, 2, 1, 3)

    qh, kh, vh = split(q), split(k), split(v)
    s = jnp.einsum("bhqd,bhkd->bhqk", qh, kh) * (dh ** -0.5)
    attn = jax.nn.softmax(s, axis=-1)
    o = jnp.einsum("bhqk,bhkd->bhqd", attn, vh)
    o = o.transpose(0, 2, 1, 3).reshape(B, N, heads * dh)
    x = x + o @ a["wo"].T + a["bo"]

    c = p["conv"]
    inner = c["gamma"].shape[0]
    y = ln(x, c["ln_w"], c["ln_b"])
    z = y @ c["w1"].T + c["b1"]
    hc = z[..., :inner] * jax.nn.sigmoid(z[..., inner:])
    pad_l, pad_r = (kernel_size - 1, 0) if causal else calc_same_padding(kernel_size)
    hp = jnp.pad(hc, ((0, 0), (pad_l, pad_r), (0, 0)))
    dw = jnp.zeros_like(hc)
    for kk in range(kernel_size):
        dw = dw + hp[:, kk:kk + N, :] * c["wd"][:, kk][None, None, :]
    dw = dw + c["bd"]
    sw = dw * jax.nn.sigmoid(dw)
    cm = sw.mean(-1, keepdims=True)
    cv = ((sw - cm) ** 2).mean(-1, keepdims=True)
    cl = (sw - cm) * jax.lax.rsqrt(jnp.maximum(cv, 1e-6)) * c["gamma"]
    x = x + cl @ c["w2"].T + c["b2"]

    x = x + 0.5 * ff(x, p["ff2"])
    return ln(x, p["post"]["ln_w"], p["post"]["ln_b"])


# --------------------------------------------------------------------------- #
# deterministic parameter init (PyTorch-layout weights)
# --------------------------------------------------------------------------- #
def init_params(key, *, dim, heads, dim_head, ff_mult, conv_expansion, conv_kernel):
    hidden = dim * ff_mult
    inner_attn = heads * dim_head
    inner_conv = dim * conv_expansion
    ks = iter(jax.random.split(key, 32))
    f32 = jnp.float32

    def nrm(shape, scale):
        return (scale * jax.random.normal(next(ks), shape)).astype(f32)

    def ff_params():
        return dict(ln_w=1.0 + nrm((dim,), 0.1), ln_b=nrm((dim,), 0.1),
                    w1=nrm((hidden, dim), dim ** -0.5), b1=nrm((hidden,), 0.1),
                    w2=nrm((dim, hidden), hidden ** -0.5), b2=nrm((dim,), 0.1))

    attn = dict(ln_w=1.0 + nrm((dim,), 0.1), ln_b=nrm((dim,), 0.1),
                wq=nrm((inner_attn, dim), dim ** -0.5),
                wkv=nrm((2 * inner_attn, dim), dim ** -0.5),
                wo=nrm((dim, inner_attn), inner_attn ** -0.5),
                bo=nrm((dim,), 0.1))
    conv = dict(ln_w=1.0 + nrm((dim,), 0.1), ln_b=nrm((dim,), 0.1),
                w1=nrm((2 * inner_conv, dim), dim ** -0.5),
                b1=nrm((2 * inner_conv,), 0.1),
                wd=nrm((inner_conv, conv_kernel), 0.15), bd=nrm((inner_conv,), 0.1),
                gamma=1.0 + nrm((inner_conv,), 0.1),
                w2=nrm((dim, inner_conv), inner_conv ** -0.5), b2=nrm((dim,), 0.1))
    post = dict(ln_w=1.0 + nrm((dim,), 0.1), ln_b=nrm((dim,), 0.1))
    return dict(ff1=ff_params(), attn=attn, conv=conv, ff2=ff_params(), post=post)


# --------------------------------------------------------------------------- #
if __name__ == "__main__":
    # dim=128 keeps every store lane-dense and every contraction 128-aligned
    # (review: the single biggest measured lever); still a small demo shape.
    B, N, dim = 2, 16, 128
    heads, dim_head = 8, 64
    ff_mult, conv_expansion, conv_kernel = 4, 2, 31

    key = jax.random.PRNGKey(0)
    k_x, k_p = jax.random.split(key)
    x = jax.random.normal(k_x, (B, N, dim), jnp.float32)
    params = init_params(k_p, dim=dim, heads=heads, dim_head=dim_head,
                         ff_mult=ff_mult, conv_expansion=conv_expansion,
                         conv_kernel=conv_kernel)

    ref = reference_block(x, params, heads=heads, kernel_size=conv_kernel,
                          causal=False)

    # f32 path (f32 MXU operands, f32 inter-stage): tight check vs reference.
    prep32 = prepare_params(params, heads=heads, mxu_dtype=jnp.float32)
    out32 = jax.block_until_ready(
        conformer_block(x, prep32, kernel_size=conv_kernel, causal=False))
    assert out32.shape == (B, N, dim)
    assert jnp.allclose(out32, ref, atol=2e-3, rtol=2e-3), "f32 kernel mismatch"

    # bf16 fast path: bf16 MXU operands, bf16 inter-stage activations, bf16
    # depthwise-conv taps (f32 accumulation of residual / LN math in-kernel).
    prep16 = prepare_params(params, heads=heads, mxu_dtype=jnp.bfloat16)
    out16 = jax.block_until_ready(
        conformer_block(x, prep16, kernel_size=conv_kernel, causal=False))
    assert out16.shape == (B, N, dim)
    assert jnp.allclose(out16, ref, atol=1e-1, rtol=1e-1), "bf16 kernel mismatch"

    print("KERNEL_OK")
</pallas_src>

<mosaic_0001>
module attributes {stable_mosaic.version = 11 : i64} {
  func.func @_ff_kernel(%arg0: i32, %arg1: i32, %arg2: memref<1x16x128xf32, #tpu.memory_space<vmem>>, %arg3: memref<1x128xf32, #tpu.memory_space<vmem>>, %arg4: memref<1x128xf32, #tpu.memory_space<vmem>>, %arg5: memref<128x512xf32, #tpu.memory_space<vmem>>, %arg6: memref<1x512xf32, #tpu.memory_space<vmem>>, %arg7: memref<512x128xf32, #tpu.memory_space<vmem>>, %arg8: memref<1x128xf32, #tpu.memory_space<vmem>>, %arg9: memref<1x16x128xf32, #tpu.memory_space<vmem>>) attributes {dimension_semantics = [#tpu.dimension_semantics<parallel>, #tpu.dimension_semantics<parallel>], iteration_bounds = array<i64: 2, 1>, scalar_prefetch = 0 : i64, scratch_operands = 0 : i64, tpu.core_type = #tpu.core_type<tc>, window_params = [{transform_indices = @transform_0, window_bounds = array<i64: 1, 16, 128>}, {pipeline_mode = #tpu.pipeline_mode<synchronous>, transform_indices = @transform_1, window_bounds = array<i64: 1, 128>}, {pipeline_mode = #tpu.pipeline_mode<synchronous>, transform_indices = @transform_2, window_bounds = array<i64: 1, 128>}, {pipeline_mode = #tpu.pipeline_mode<synchronous>, transform_indices = @transform_3, window_bounds = array<i64: 128, 512>}, {pipeline_mode = #tpu.pipeline_mode<synchronous>, transform_indices = @transform_4, window_bounds = array<i64: 1, 512>}, {pipeline_mode = #tpu.pipeline_mode<synchronous>, transform_indices = @transform_5, window_bounds = array<i64: 512, 128>}, {pipeline_mode = #tpu.pipeline_mode<synchronous>, transform_indices = @transform_6, window_bounds = array<i64: 1, 128>}, {transform_indices = @transform_7, window_bounds = array<i64: 1, 16, 128>}]} {
    %c0 = arith.constant 0 : index
    %c0_0 = arith.constant 0 : index
    %c0_1 = arith.constant 0 : index
    %0 = vector.load %arg2[%c0, %c0_0, %c0_1] : memref<1x16x128xf32, #tpu.memory_space<vmem>>, vector<1x16x128xf32>
    %1 = vector.shape_cast %0 : vector<1x16x128xf32> to vector<16x128xf32>
    %c0_2 = arith.constant 0 : index
    %c0_3 = arith.constant 0 : index
    %2 = vector.load %arg3[%c0_2, %c0_3] : memref<1x128xf32, #tpu.memory_space<vmem>>, vector<1x128xf32>
    %c0_4 = arith.constant 0 : index
    %c0_5 = arith.constant 0 : index
    %3 = vector.load %arg4[%c0_4, %c0_5] : memref<1x128xf32, #tpu.memory_space<vmem>>, vector<1x128xf32>
    %cst = arith.constant dense<0.000000e+00> : vector<16xf32>
    %4 = vector.multi_reduction <add>, %1, %cst [1] : vector<16x128xf32> to vector<16xf32>
    %5 = vector.shape_cast %4 : vector<16xf32> to vector<16x1xf32>
    %cst_6 = arith.constant 1.280000e+02 : f32
    %6 = vector.broadcast %cst_6 : f32 to vector<16x1xf32>
    %7 = arith.divf %5, %6 : vector<16x1xf32>
    %8 = vector.broadcast %7 : vector<16x1xf32> to vector<16x128xf32>
    %9 = arith.subf %1, %8 : vector<16x128xf32>
    %10 = arith.mulf %9, %9 : vector<16x128xf32>
    %cst_7 = arith.constant dense<0.000000e+00> : vector<16xf32>
    %11 = vector.multi_reduction <add>, %10, %cst_7 [1] : vector<16x128xf32> to vector<16xf32>
    %12 = vector.shape_cast %11 : vector<16xf32> to vector<16x1xf32>
    %cst_8 = arith.constant 1.280000e+02 : f32
    %13 = vector.broadcast %cst_8 : f32 to vector<16x1xf32>
    %14 = arith.divf %12, %13 : vector<16x1xf32>
    %15 = vector.broadcast %7 : vector<16x1xf32> to vector<16x128xf32>
    %16 = arith.subf %1, %15 : vector<16x128xf32>
    %cst_9 = arith.constant 9.99999974E-6 : f32
    %17 = vector.broadcast %cst_9 : f32 to vector<16x1xf32>
    %18 = arith.addf %14, %17 : vector<16x1xf32>
    %19 = math.rsqrt %18 : vector<16x1xf32>
    %20 = vector.broadcast %19 : vector<16x1xf32> to vector<16x128xf32>
    %21 = arith.mulf %16, %20 : vector<16x128xf32>
    %22 = vector.broadcast %2 : vector<1x128xf32> to vector<16x128xf32>
    %23 = arith.mulf %21, %22 : vector<16x128xf32>
    %24 = vector.broadcast %3 : vector<1x128xf32> to vector<16x128xf32>
    %25 = arith.addf %23, %24 : vector<16x128xf32>
    %c0_10 = arith.constant 0 : index
    %c0_11 = arith.constant 0 : index
    %26 = vector.load %arg5[%c0_10, %c0_11] : memref<128x512xf32, #tpu.memory_space<vmem>>, vector<128x512xf32>
    %cst_12 = arith.constant dense<0.000000e+00> : vector<16x512xf32>
    %27 = tpu.matmul %25, %26, %cst_12 {dimension_numbers = #tpu.dot_dimension_numbers<[1], [0], [0], [1], [0, 0, 1, 1], [], []>} : vector<16x128xf32>, vector<128x512xf32>, vector<16x512xf32> -> vector<16x512xf32>
    %c0_13 = arith.constant 0 : index
    %c0_14 = arith.constant 0 : index
    %28 = vector.load %arg6[%c0_13, %c0_14] : memref<1x512xf32, #tpu.memory_space<vmem>>, vector<1x512xf32>
    %29 = vector.broadcast %28 : vector<1x512xf32> to vector<16x512xf32>
    %30 = arith.addf %27, %29 : vector<16x512xf32>
    %31 = arith.negf %30 : vector<16x512xf32>
    %32 = math.exp %31 : vector<16x512xf32>
    %cst_15 = arith.constant 1.000000e+00 : f32
    %33 = vector.broadcast %cst_15 : f32 to vector<16x512xf32>
    %34 = arith.addf %33, %32 : vector<16x512xf32>
    %35 = arith.divf %33, %34 : vector<16x512xf32>
    %36 = arith.mulf %30, %35 : vector<16x512xf32>
    %c0_16 = arith.constant 0 : index
    %c0_17 = arith.constant 0 : index
    %37 = vector.load %arg7[%c0_16, %c0_17] : memref<512x128xf32, #tpu.memory_space<vmem>>, vector<512x128xf32>
    %cst_18 = arith.constant dense<0.000000e+00> : vector<16x128xf32>
    %38 = tpu.matmul %36, %37, %cst_18 {dimension_numbers = #tpu.dot_dimension_numbers<[1], [0], [0], [1], [0, 0, 1, 1], [], []>} : vector<16x512xf32>, vector<512x128xf32>, vector<16x128xf32> -> vector<16x128xf32>
    %c0_19 = arith.constant 0 : index
    %c0_20 = arith.constant 0 : index
    %39 = vector.load %arg8[%c0_19, %c0_20] : memref<1x128xf32, #tpu.memory_space<vmem>>, vector<1x128xf32>
    %40 = vector.broadcast %39 : vector<1x128xf32> to vector<16x128xf32>
    %41 = arith.addf %38, %40 : vector<16x128xf32>
    %cst_21 = arith.constant 5.000000e-01 : f32
    %42 = vector.broadcast %cst_21 : f32 to vector<16x128xf32>
    %43 = arith.mulf %42, %41 : vector<16x128xf32>
    %44 = arith.addf %1, %43 : vector<16x128xf32>
    %c0_22 = arith.constant 0 : index
    %c0_23 = arith.constant 0 : index
    %c0_24 = arith.constant 0 : index
    %45 = vector.load %arg9[%c0_22, %c0_23, %c0_24] : memref<1x16x128xf32, #tpu.memory_space<vmem>>, vector<1x16x128xf32>
    %46 = vector.shape_cast %45 : vector<1x16x128xf32> to vector<16x128xf32>
    %47 = vector.shape_cast %44 : vector<16x128xf32> to vector<1x16x128xf32>
    tpu.vector_store %arg9[%c0_22, %c0_23, %c0_24], %47 {strides = array<i32>} : memref<1x16x128xf32, #tpu.memory_space<vmem>>, vector<1x16x128xf32>,
    return
  }
  func.func @transform_0(%arg0: i32, %arg1: i32) -> (i32, i32, i32) {
    %c0_i32 = arith.constant 0 : i32
    %c0_i32_0 = arith.constant 0 : i32
    return %arg0, %arg1, %c0_i32 : i32, i32, i32
  }
  func.func @transform_1(%arg0: i32, %arg1: i32) -> (i32, i32) {
    %c0_i32 = arith.constant 0 : i32
    %c0_i32_0 = arith.constant 0 : i32
    %c0_i32_1 = arith.constant 0 : i32
    return %c0_i32, %c0_i32_0 : i32, i32
  }
  func.func @transform_2(%arg0: i32, %arg1: i32) -> (i32, i32) {
    %c0_i32 = arith.constant 0 : i32
    %c0_i32_0 = arith.constant 0 : i32
    %c0_i32_1 = arith.constant 0 : i32
    return %c0_i32, %c0_i32_0 : i32, i32
  }
  func.func @transform_3(%arg0: i32, %arg1: i32) -> (i32, i32) {
    %c0_i32 = arith.constant 0 : i32
    %c0_i32_0 = arith.constant 0 : i32
    %c0_i32_1 = arith.constant 0 : i32
    return %c0_i32, %c0_i32_0 : i32, i32
  }
  func.func @transform_4(%arg0: i32, %arg1: i32) -> (i32, i32) {
    %c0_i32 = arith.constant 0 : i32
    %c0_i32_0 = arith.constant 0 : i32
    %c0_i32_1 = arith.constant 0 : i32
    return %c0_i32, %c0_i32_0 : i32, i32
  }
  func.func @transform_5(%arg0: i32, %arg1: i32) -> (i32, i32) {
    %c0_i32 = arith.constant 0 : i32
    %c0_i32_0 = arith.constant 0 : i32
    %c0_i32_1 = arith.constant 0 : i32
    return %c0_i32, %c0_i32_0 : i32, i32
  }
  func.func @transform_6(%arg0: i32, %arg1: i32) -> (i32, i32) {
    %c0_i32 = arith.constant 0 : i32
    %c0_i32_0 = arith.constant 0 : i32
    %c0_i32_1 = arith.constant 0 : i32
    return %c0_i32, %c0_i32_0 : i32, i32
  }
  func.func @transform_7(%arg0: i32, %arg1: i32) -> (i32, i32, i32) {
    %c0_i32 = arith.constant 0 : i32
    %c0_i32_0 = arith.constant 0 : i32
    return %arg0, %arg1, %c0_i32 : i32, i32, i32
  }
}

</mosaic_0001>

<bundles_post_ra>
// kernel: tpu_custom_call.1
= control target key start
LH: loop header
LB: loop body
LE: loop exit
PB: predicated region body
PF: predicated region fallthrough
CT: control target
= control target key end

     0   :  { %12 = vsyncpa [#allocation3], 0  ;;  %s1918_s0 = inlined_call_operand.hbm [shape: f32[2,16,128], index: 0, kind: input, shape index: {}]   ;;  %s1919_s1 = inlined_call_operand.vmem [shape: f32[1,128], index: 1, kind: input, shape index: {}]   ;;  %s1920_s2 = inlined_call_operand.vmem [shape: f32[1,128], index: 2, kind: input, shape index: {}]   ;;  %s1921_s3 = inlined_call_operand.hbm [shape: f32[128,512], index: 3, kind: input, shape index: {}]   ;;  %s1922_s4 = inlined_call_operand.vmem [shape: f32[1,512], index: 4, kind: input, shape index: {}]   ;;  %s1923_s5 = inlined_call_operand.hbm [shape: f32[512,128], index: 5, kind: input, shape index: {}]   ;;  %s1924_s6 = inlined_call_operand.vmem [shape: f32[1,128], index: 6, kind: input, shape index: {}]   ;;  %s1925_s7 = inlined_call_operand.hbm [shape: f32[2,16,128], index: 7, kind: output, shape index: {}]  }
   0x1   :  { %14 = vsyncpa [#allocation3 + $0x1], 0 }
   0x2   :  { %15 = vsyncpa [#allocation6], 0 }
   0x3   :  { %16 = vsyncpa [#allocation4], 0 }
   0x4   :  { %18 = vsyncpa [#allocation4 + $0x1], 0  ;;  %s1621_s24 = smov 0   ;;  %s1623_s25 = smov 0  }
   0x5   :  { %s1625_s26 = smov 0   ;;  %s1627_s27 = smov 0  }
   0x6   :  { %s1629_s28 = smov 0   ;;  %s1631_s29 = smov 0  }
   0x7 LB: > { %1933 = sst [smem:[#allocation12_spill]] %s1548_s24  ;;  %s1034_s30 = sadd.s32 4294967295, %s1568_s29   ;;  %s1568_s29 = sphi %s1631_s29, %s24_s29   ;;  %s1564_s28 = sphi %s1629_s28, %s1955_s28   ;;  %s1560_s27 = sphi %s1627_s27, %s1954_s27   ;;  %s1556_s26 = sphi %s1625_s26, %s1953_s26   ;;  %s1552_s25 = sphi %s1623_s25, %s1952_s25   ;;  %s1548_s24 = sphi %s1621_s24, %s1951_s24  }
   0x8   : > { %s1035_s8 = sadd.s32 4294967294, %s1568_s29   ;;  %p58_p0 = scmp.ne.s32.totalorder %s1552_s25, %s1548_s24 }
   0x9   : > { %p1655_p1 = scmp.eq.s32.totalorder %s1034_s30, 0  ;;  %p1659_p2 = scmp.eq.s32.totalorder %s1034_s30, 1 }
   0xa   : > { %p216_p3 = scmp.eq.s32.totalorder %s1035_s8, 1  ;;  %p1036_p5 = scmp.ge.s32.totalorder %s1568_s29, 1 }
   0xb   : > { %s1934_s9 = scalar_select %p1655_p1, 1, 0 }
   0xc   : > { %p1665_p4 = por %p1655_p1, %p58_p0  ;;  %p1670_p6 = por %p216_p3, %p58_p0 }
   0xd   : > { %p223_p7 = scmp.lt.s32.totalorder %s1568_s29, 3  ;;  %s1570_s14 = smov [#allocation5]  }
   0xe   : > { %s1936_s11 = scalar_select %p1665_p4, 1, 0 }
   0xf   : > { %s1937_s12 = scalar_select %p1670_p6, 1, 0 }
  0x10   : > { %p1675_p8 = pnand %p1036_p5, %p223_p7  ;;  %s241_s15 = sshll.u32 %s1570_s14, 4  ;;  %s1679_s15 = int_to_ptr.vmem [resolvable:$true] %s241_s15 }
  0x11   : > { %1938 = sst [smem:[#allocation13_spill]] %s1937_s12  ;;  %s1571_s17 = smov [#allocation7]  }
  0x12   : > { %p1282_p9 = pneg %p1675_p8  ;;  %s257_s18 = sshll.u32 %s1571_s17, 4  ;;  %s1690_s18 = int_to_ptr.vmem [resolvable:$true] %s257_s18 }
  0x13   : > { %s1396_s21 = scalar_lea.hbm %s1921_s3, 8192 }
  0x14   : > { %p1686_p11 = pnand %p1282_p9, %p1655_p1  ;;  %p1397_p12 = scmp.ne.s32.totalorder %s1921_s3, %s1396_s21 }
  0x15   : > { %p1403_p5 = scmp.lt.u32.totalorder %s1396_s21, %s1921_s3 }
  0x16   : > { %p1398_p13 = pneg %p1686_p11 }
  0x18   : > { %p1399_p0 = pnand %p1398_p13, %p1397_p12 }
  0x1a   : > { %p1400_p3 = pneg %p1399_p0 }
  0x1c   : > { %p1405_p7 = pnand %p1403_p5, %p1400_p3 }
  0x1e   : > { %1408 = shalt.err (!%p1405_p7)
}
  0x1f   : > { %s1409_s14 = scalar_lea.vmem %s1679_s15, 8192  ;;  %p1417_p1 = scmp.lt.s32.totalorder %s1679_s15, %s1679_s15 }
  0x20   : > { %p1410_p9 = scmp.ne.s32.totalorder %s1679_s15, %s1409_s14  ;;  %p1418_p12 = scmp.lt.s32.totalorder %s1409_s14, %s1409_s14 }
  0x22   : > { %p1412_p10 = pnand %p1410_p9, %p1398_p13  ;;  %p1419_p0 = por %p1418_p12, %p1417_p1 }
  0x24   : > { %p1413_p6 = pneg %p1412_p10 }
  0x26   : > { %p1420_p4 = pnand %p1419_p0, %p1413_p6 }
  0x28   : > { %1423 = shalt.err (!%p1420_p4)
}
  0x29   : > { %s1572_s17 = smov 512   ;;  %s1573_s19 = smov 32  }
  0x2a   : > { %1285 = dma.hbm_to_vmem [thread:$0]  (!%p1686_p11), %s1921_s3, 8192, %s1679_s15, [#allocation6], %s1572_s17, %s1572_s17, %s1573_s19  }
  0x2b   : > { %s1424_s30 = scalar_lea.hbm %s1923_s5, 8192 }
  0x2c   : > { %p1425_p1 = scmp.ne.s32.totalorder %s1923_s5, %s1424_s30  ;;  %p1431_p10 = scmp.lt.u32.totalorder %s1424_s30, %s1923_s5 }
  0x2e   : > { %p1427_p4 = pnand %p1425_p1, %p1398_p13 }
  0x30   : > { %p1428_p6 = pneg %p1427_p4 }
  0x32   : > { %p1433_p3 = pnand %p1431_p10, %p1428_p6 }
  0x34   : > { %1436 = shalt.err (!%p1433_p3)
}
  0x35   : > { %s1437_s15 = scalar_lea.vmem %s1690_s18, 8192  ;;  %p1445_p12 = scmp.lt.s32.totalorder %s1690_s18, %s1690_s18 }
  0x36   : > { %p1438_p5 = scmp.ne.s32.totalorder %s1690_s18, %s1437_s15  ;;  %p1446_p0 = scmp.lt.s32.totalorder %s1437_s15, %s1437_s15 }
  0x38   : > { %p1440_p7 = pnand %p1438_p5, %p1398_p13  ;;  %p1447_p1 = por %p1446_p0, %p1445_p12 }
  0x3a   : > { %p1441_p9 = pneg %p1440_p7 }
  0x3c   : > { %p1448_p4 = pnand %p1447_p1, %p1441_p9 }
  0x3e   : > { %1451 = shalt.err (!%p1448_p4)
}
  0x3f   : > { %s1931_s24 = smov 128   ;;  %s1575_s12 = smov 8  }
  0x40   : > { %1288 = dma.hbm_to_vmem [thread:$0]  (!%p1686_p11), %s1923_s5, 8192, %s1690_s18, [#allocation6], %s1931_s24, %s1931_s24, %s1575_s12  }
  0x41   : > { %s36_s20 = sadd.s32 1, %s1564_s28  ;;  %s45_s21 = sadd.s32 1, %s1556_s26 }
  0x42   : > { %p38_p13 = scmp.ge.s32.totalorder %s36_s20, 2  ;;  %p52_p6 = scmp.ne.s32.totalorder %s1556_s26, %s1552_s25 }
  0x43   : > { %p53_p10 = scmp.eq.s32.totalorder %s1568_s29, 0  ;;  %p1299_p3 = scmp.lt.s32.totalorder %s1568_s29, 2 }
  0x44   : > { %s1957_s20 = smov (%p38_p13, %s36_s20), 0  ;;  %p1757_p7 = por %p1659_p2, %p52_p6 }
  0x45   : > { %p54_p5 = por %p53_p10, %p52_p6  ;;  %s40_s22 = ssub.s32 %s1564_s28, %s1957_s20 }
  0x46   : > { %s1941_s16 = scalar_select %p1757_p7, 1, 0 }
  0x47   : > { %s274_s23 = sand.u32 1, %s1556_s26   ;;  %p43_p9 = scmp.eq.s32.totalorder %s40_s22, 0 }
  0x48   : > { %s1040_s18 = sshll.u32 %s274_s23, 4  ;;  %s1064_s30 = sshll.u32 %s1564_s28, 8 }
  0x49   : > { %s1766_s8 = scalar_select %p43_p9, %s1556_s26, %s45_s21  }
  0x4a   : > { %s1771_s17 = scalar_lea.hbm %s1918_s0, %s1064_s30  ;;  %s278_s10 = scalar_lea.vmem [#allocation2], %s1040_s18 }
  0x4b   : > { %s287_s19 = sshll.u32 %s278_s10, 4  ;;  %p1775_p2 = pnand %p1299_p3, %p54_p5  ;;  %s1779_s19 = int_to_ptr.vmem [resolvable:$true] %s287_s19 }
  0x4c   : > { %s1781_s21 = scalar_lea.sflag [#allocation3], %s274_s23  ;;  %s1452_s22 = scalar_lea.hbm %s1771_s17, 256 }
  0x4d   : > { %p1453_p11 = scmp.ne.s32.totalorder %s1771_s17, %s1452_s22  ;;  %p1454_p12 = pneg %p1775_p2 }
  0x4e   : > { %s1457_s14 = scalar_lea.hbm %s1918_s0, 512  ;;  %p1458_p4 = scmp.lt.u32.totalorder %s1771_s17, %s1918_s0 }
  0x4f   : > { %p1455_p0 = pnand %p1454_p12, %p1453_p11  ;;  %p1459_p13 = scmp.lt.u32.totalorder %s1457_s14, %s1452_s22 }
  0x50   : > { %p1461_p10 = scmp.lt.u32.totalorder %s1452_s22, %s1771_s17 }
  0x51   : > { %p1456_p1 = pneg %p1455_p0  ;;  %p1460_p6 = por %p1459_p13, %p1458_p4 }
  0x53   : > { %p1462_p3 = por %p1461_p10, %p1460_p6 }
  0x55   : > { %p1463_p5 = pnand %p1462_p3, %p1456_p1 }
  0x57   : > { %1466 = shalt.err (!%p1463_p5)
}
  0x58   : > { %s1467_s23 = scalar_lea.vmem %s1779_s19, 256  ;;  %s1576_s18 = smov [#allocation2]  }
  0x59   : > { %p1468_p9 = scmp.ne.s32.totalorder %s1779_s19, %s1467_s23  ;;  %s1472_s30 = sshll.u32 %s1576_s18, 4  ;;  %s1473_s30 = int_to_ptr.vmem [resolvable:$false] %s1472_s30 }
  0x5a   : > { %s1474_s15 = scalar_lea.vmem %s1473_s30, 512  ;;  %p1475_p7 = scmp.lt.s32.totalorder %s1779_s19, %s1473_s30 }
  0x5b   : > { %p1470_p11 = pnand %p1468_p9, %p1454_p12  ;;  %p1476_p4 = scmp.lt.s32.totalorder %s1474_s15, %s1467_s23 }
  0x5d   : > { %p1471_p0 = pneg %p1470_p11  ;;  %p1477_p13 = por %p1476_p4, %p1475_p7 }
  0x5f   : > { %p1478_p6 = pnand %p1477_p13, %p1471_p0 }
  0x61   : > { %1481 = shalt.err (!%p1478_p6)
}
  0x62   : > { %s1943_s22 = smov 128   ;;  %299 = sbr.rel (%p1675_p8) target bundleno = 908 (0x38c), region = 48 }
  0x63   : > { %1292 = dma.hbm_to_vmem [thread:$0]  (!%p1775_p2), %s1771_s17, 256, %s1779_s19, %s1781_s21, %s1943_s22, %s1943_s22, %s1575_s12  }
  0x64   : > { %s1815_s14 = sand.u32 (!%p1675_p8), 1, %s1552_s25   ;;  %p1944_p7 = scmp.ne.s32.totalorder (!%p1675_p8), %s1936_s11, 0 }
  0x65   : > { %s1044_s10 = sshll.u32 (!%p1675_p8), %s1815_s14, 4  ;;  %s302_s23 = scalar_lea.sflag (!%p1675_p8), [#allocation3], %s1815_s14 }
  0x66   : > { %s305_s24 = scalar_lea.vmem (!%p1675_p8), [#allocation2], %s1044_s10 }
  0x69   : > { %1535 = dma.done.wait (%p1944_p7), %s302_s23, 256  }
  0x6a   : > { %1537 = vsyncadd (%p1944_p7), %s302_s23, 4294967040  ;;  %p1945_p2 = scmp.ne.s32.totalorder %s1934_s9, 0 }
  0x6c   : > { %1539 = dma.done.wait (%p1945_p2), [#allocation6], 16384  }
  0x6d   : > { %1541 = vsyncadd (%p1945_p2), [#allocation6], 4294950912  ;;  %v1829_v0 = vld [vmem:[%s305_s24] sm:$0xff]  ;;  %v1832_v1 = vld [vmem:[%s305_s24 + $0x8] sm:$0xff]  ;;  %s343_s30 = scalar_lea.vmem [#allocation8], %s1044_s10  ;;  %s1065_s22 = sshll.u32 %s1560_s27, 8 }
  0x6e   : > { %350 = vadd.xlane.f32.xlu0 %v1829_v0  ;;  %v390_v2 = vld [vmem:[#allocation5 + $0x8] sm:$0xff]  ;;  %v392_v4 = vld [vmem:[#allocation5 + $0x18] sm:$0xff]  ;;  %v389_v7 = vld [vmem:[#allocation5] sm:$0xff]  ;;  %s928_s15 = sshll.u32 %s343_s30, 4  ;;  %s1868_s9 = scalar_lea.hbm %s1925_s7, %s1065_s22  ;;  %s1863_s15 = int_to_ptr.vmem [resolvable:$true] %s928_s15 }
  0x6f   : > { %v394_v3 = vld [vmem:[#allocation5 + $0x28] sm:$0xff]  ;;  %v396_v6 = vld [vmem:[#allocation5 + $0x38] sm:$0xff]  ;;  %v393_v8 = vld [vmem:[#allocation5 + $0x20] sm:$0xff]  ;;  %s913_s10 = scalar_lea.sflag [#allocation4], %s1815_s14  ;;  %s1482_s11 = scalar_lea.vmem %s1863_s15, 256 }
  0x70   : > { %v1142_v5 = vpack.c.bf16 %v394_v3, %v390_v2  ;;  %v1174_v9 = vpack.c.bf16 %v396_v6, %v392_v4  ;;  %v1144_v10 = vpack.c.bf16 %v393_v8, %v389_v7  ;;  %v391_v11 = vld [vmem:[#allocation5 + $0x10] sm:$0xff]  ;;  %v398_v13 = vld [vmem:[#allocation5 + $0x48] sm:$0xff]  ;;  %v400_v16 = vld [vmem:[#allocation5 + $0x58] sm:$0xff]  ;;  %p1483_p8 = scmp.ne.s32.totalorder %s1863_s15, %s1482_s11  ;;  %p1946_p12 = scmp.ne.s32.totalorder %s1941_s16, 0 }
  0x71   : > { %v395_v12 = vld [vmem:[#allocation5 + $0x30] sm:$0xff]  ;;  %v402_v15 = vld [vmem:[#allocation5 + $0x68] sm:$0xff]  ;;  %v404_v17 = vld [vmem:[#allocation5 + $0x78] sm:$0xff]  ;;  %s1578_s27 = smov [#allocation8]  }
  0x72   : > { %352 = vadd.xlane.f32.xlu0 %v1832_v1  ;;  %1143 = vmatprep.subr.bf16.mxu0 %v1142_v5  ;;  %v1176_v14 = vpack.c.bf16 %v395_v12, %v391_v11  ;;  %v1146_v18 = vpack.c.bf16 %v402_v15, %v398_v13  ;;  %v1178_v19 = vpack.c.bf16 %v404_v17, %v400_v16  ;;  %v397_v20 = vld [vmem:[#allocation5 + $0x40] sm:$0xff]  ;;  %v399_v22 = vld [vmem:[#allocation5 + $0x50] sm:$0xff]  ;;  %v406_v25 = vld [vmem:[#allocation5 + $0x88] sm:$0xff]  ;;  %p1484_p1 = pnand %p1483_p8, %p1946_p12  ;;  %s1486_s13 = sshll.u32 %s1578_s27, 4  ;;  %s1487_s13 = int_to_ptr.vmem [resolvable:$false] %s1486_s13 }
  0x73   : > { %1175 = vmatprep.subr.bf16.mxu1 %v1174_v9  ;;  %1145 = vmatpush1.bf16.msra.mxu0 %v1144_v10  ;;  %v401_v21 = vld [vmem:[#allocation5 + $0x60] sm:$0xff]  ;;  %v403_v24 = vld [vmem:[#allocation5 + $0x70] sm:$0xff]  ;;  %v410_v26 = vld [vmem:[#allocation5 + $0xa8] sm:$0xff]  ;;  %s1488_s12 = scalar_lea.vmem %s1487_s13, 512  ;;  %p1489_p3 = scmp.lt.s32.totalorder %s1863_s15, %s1487_s13 }
  0x74   : > { %1177 = vmatpush1.bf16.msra.mxu1 %v1176_v14  ;;  %v1148_v23 = vpack.c.bf16 %v401_v21, %v397_v20  ;;  %1147 = vmatprep.subr.bf16.mxu0 %v1146_v18  ;;  %v1180_v27 = vpack.c.bf16 %v403_v24, %v399_v22  ;;  %v1150_v28 = vpack.c.bf16 %v410_v26, %v406_v25  ;;  %v408_v29 = vld [vmem:[#allocation5 + $0x98] sm:$0xff]  ;;  %v405_v31 = vld [vmem:[#allocation5 + $0x80] sm:$0xff]  ;;  %v407_v34 = vld [vmem:[#allocation5 + $0x90] sm:$0xff]  ;;  %v1577_v24 = vmov 0.0   ;;  %p1485_p10 = pneg %p1484_p1  ;;  %p1490_p5 = scmp.lt.s32.totalorder %s1488_s12, %s1482_s11 }
  0x75   : > { %1179 = vmatprep.subr.bf16.mxu1 %v1178_v19  ;;  %v412_v30 = vld [vmem:[#allocation5 + $0xb8] sm:$0xff]  ;;  %v409_v33 = vld [vmem:[#allocation5 + $0xa0] sm:$0xff]  ;;  %v411_v35 = vld [vmem:[#allocation5 + $0xb0] sm:$0xff]  ;;  %539 = vmatprep.mubr.f32.mxu0 %v1577_v24 }
  0x76   : > { %v1182_v32 = vpack.c.bf16 %v412_v30, %v408_v29  ;;  %v1152_v36 = vpack.c.bf16 %v409_v33, %v405_v31  ;;  %v1184_v37 = vpack.c.bf16 %v411_v35, %v407_v34  ;;  %v414_v46 = vld [vmem:[#allocation5 + $0xc8] sm:$0xff]  ;;  %v416_v48 = vld [vmem:[#allocation5 + $0xd8] sm:$0xff]  ;;  %v413_v51 = vld [vmem:[#allocation5 + $0xc0] sm:$0xff]  ;;  %616 = vmatprep.mubr.f32.mxu1 %v1577_v24  ;;  %p1491_p9 = por %p1490_p5, %p1489_p3 }
  0x77   : > { %1149 = vmatpush1.bf16.msra.mxu0 %v1148_v23  ;;  %v418_v47 = vld [vmem:[#allocation5 + $0xe8] sm:$0xff]  ;;  %v420_v50 = vld [vmem:[#allocation5 + $0xf8] sm:$0xff]  ;;  %v417_v52 = vld [vmem:[#allocation5 + $0xe0] sm:$0xff] }
  0x78   : > { %1181 = vmatpush1.bf16.msra.mxu1 %v1180_v27  ;;  %1151 = vmatprep.subr.bf16.mxu0 %v1150_v28  ;;  %v1154_v49 = vpack.c.bf16 %v418_v47, %v414_v46  ;;  %v1186_v53 = vpack.c.bf16 %v420_v50, %v416_v48  ;;  %v1156_v54 = vpack.c.bf16 %v417_v52, %v413_v51  ;;  %v415_v55 = vld [vmem:[#allocation5 + $0xd0] sm:$0xff]  ;;  %v422_v58 = vld [vmem:[#allocation5 + $0x108] sm:$0xff]  ;;  %v424_v60 = vld [vmem:[#allocation5 + $0x118] sm:$0xff]  ;;  %p1492_p11 = pnand %p1491_p9, %p1485_p10 }
  0x79   : > { %1183 = vmatprep.subr.bf16.mxu1 %v1182_v32  ;;  %v419_v56 = vld [vmem:[#allocation5 + $0xf0] sm:$0xff]  ;;  %v426_v59 = vld [vmem:[#allocation5 + $0x128] sm:$0xff]  ;;  %v428_v62 = vld [vmem:[#allocation5 + $0x138] sm:$0xff] }
  0x7a   : > { %v1188_v57 = vpack.c.bf16 %v419_v56, %v415_v55  ;;  %v1158_v61 = vpack.c.bf16 %v426_v59, %v422_v58  ;;  %v421_v63 = vld [vmem:[#allocation5 + $0x100] sm:$0xff]  ;;  %v1190_v3 = vpack.c.bf16 %v428_v62, %v424_v60  ;;  %v423_v5 = vld [vmem:[#allocation5 + $0x110] sm:$0xff]  ;;  %v430_v8 = vld [vmem:[#allocation5 + $0x148] sm:$0xff] }
  0x7b   : > { %1153 = vmatpush1.bf16.msra.mxu0 %v1152_v36  ;;  %v425_v2 = vld [vmem:[#allocation5 + $0x120] sm:$0xff]  ;;  %v427_v6 = vld [vmem:[#allocation5 + $0x130] sm:$0xff]  ;;  %v434_v9 = vld [vmem:[#allocation5 + $0x168] sm:$0xff] }
  0x7c   : > { %1185 = vmatpush1.bf16.msra.mxu1 %v1184_v37  ;;  %1155 = vmatprep.subr.bf16.mxu0 %v1154_v49  ;;  %v1160_v4 = vpack.c.bf16 %v425_v2, %v421_v63  ;;  %v1192_v7 = vpack.c.bf16 %v427_v6, %v423_v5  ;;  %v432_v10 = vld [vmem:[#allocation5 + $0x158] sm:$0xff]  ;;  %v1162_v11 = vpack.c.bf16 %v434_v9, %v430_v8  ;;  %v429_v13 = vld [vmem:[#allocation5 + $0x140] sm:$0xff]  ;;  %v431_v17 = vld [vmem:[#allocation5 + $0x150] sm:$0xff] }
  0x7d   : > { %1187 = vmatprep.subr.bf16.mxu1 %v1186_v53  ;;  %v436_v12 = vld [vmem:[#allocation5 + $0x178] sm:$0xff]  ;;  %v433_v14 = vld [vmem:[#allocation5 + $0x160] sm:$0xff]  ;;  %v435_v18 = vld [vmem:[#allocation5 + $0x170] sm:$0xff] }
  0x7e   : > { %v1194_v15 = vpack.c.bf16 %v436_v12, %v432_v10  ;;  %v1164_v16 = vpack.c.bf16 %v433_v14, %v429_v13  ;;  %v438_v19 = vld [vmem:[#allocation5 + $0x188] sm:$0xff]  ;;  %v1196_v20 = vpack.c.bf16 %v435_v18, %v431_v17  ;;  %v440_v22 = vld [vmem:[#allocation5 + $0x198] sm:$0xff]  ;;  %v437_v27 = vld [vmem:[#allocation5 + $0x180] sm:$0xff] }
  0x7f   : > { %1157 = vmatpush1.bf16.msra.mxu0 %v1156_v54  ;;  %v442_v21 = vld [vmem:[#allocation5 + $0x1a8] sm:$0xff]  ;;  %v444_v23 = vld [vmem:[#allocation5 + $0x1b8] sm:$0xff]  ;;  %v441_v28 = vld [vmem:[#allocation5 + $0x1a0] sm:$0xff] }
  0x80   : > { %1189 = vmatpush1.bf16.msra.mxu1 %v1188_v57  ;;  %1159 = vmatprep.subr.bf16.mxu0 %v1158_v61  ;;  %v1166_v25 = vpack.c.bf16 %v442_v21, %v438_v19  ;;  %v1198_v26 = vpack.c.bf16 %v444_v23, %v440_v22  ;;  %v439_v29 = vld [vmem:[#allocation5 + $0x190] sm:$0xff]  ;;  %v1168_v30 = vpack.c.bf16 %v441_v28, %v437_v27  ;;  %v446_v32 = vld [vmem:[#allocation5 + $0x1c8] sm:$0xff]  ;;  %v448_v36 = vld [vmem:[#allocation5 + $0x1d8] sm:$0xff] }
  0x81   : > { %1191 = vmatprep.subr.bf16.mxu1 %v1190_v3  ;;  %v443_v31 = vld [vmem:[#allocation5 + $0x1b0] sm:$0xff]  ;;  %v450_v33 = vld [vmem:[#allocation5 + $0x1e8] sm:$0xff]  ;;  %v452_v37 = vld [vmem:[#allocation5 + $0x1f8] sm:$0xff] }
  0x82   : > { %v1200_v34 = vpack.c.bf16 %v443_v31, %v439_v29  ;;  %v1170_v35 = vpack.c.bf16 %v450_v33, %v446_v32  ;;  %v1048_v54 = vld [vmem:[%s1919_s1] ss:$0 sm:$0xff]  ;;  %v702_v2 = vld [vmem:[#allocation7 + $0x88] sm:$0xff]  ;;  %v704_v12 = vld [vmem:[#allocation7 + $0x98] sm:$0xff] }
  0x83   : > { %1161 = vmatpush1.bf16.msra.mxu0 %v1160_v4  ;;  %v1049_v56 = vld [vmem:[%s1920_s2] ss:$0 sm:$0xff]  ;;  %v734_v4 = vld [vmem:[#allocation7 + $0x188] sm:$0xff]  ;;  %v735_v13 = vld [vmem:[#allocation7 + $0x190] sm:$0xff] }
  0x84   : > { %1193 = vmatpush1.bf16.msra.mxu1 %v1192_v7  ;;  %1163 = vmatprep.subr.bf16.mxu0 %v1162_v11  ;;  %v701_v63 = vld [vmem:[#allocation7 + $0x80] sm:$0xff]  ;;  %v686_v6 = vld [vmem:[#allocation7 + $0x8] sm:$0xff]  ;;  %v703_v11 = vld [vmem:[#allocation7 + $0x90] sm:$0xff] }
  0x85   : > { %1195 = vmatprep.subr.bf16.mxu1 %v1194_v15  ;;  %v1206_v3 = vpack.c.bf16 %v702_v2, %v701_v63  ;;  %v685_v5 = vld [vmem:[#allocation7] sm:$0xff]  ;;  %v718_v10 = vld [vmem:[#allocation7 + $0x108] sm:$0xff]  ;;  %v1210_v14 = vpack.c.bf16 %v704_v12, %v703_v11  ;;  %v736_v15 = vld [vmem:[#allocation7 + $0x198] sm:$0xff] }
  0x86   : > { %v1208_v8 = vpack.c.bf16 %v686_v6, %v685_v5  ;;  %v717_v9 = vld [vmem:[#allocation7 + $0x100] sm:$0xff]  ;;  %v688_v17 = vld [vmem:[#allocation7 + $0x18] sm:$0xff]  ;;  %v1242_v18 = vpack.c.bf16 %v736_v15, %v735_v13  ;;  %v738_v27 = vld [vmem:[#allocation7 + $0x1a8] sm:$0xff] }
  0x87   : > { %1165 = vmatpush1.bf16.msra.mxu0 %v1164_v16  ;;  %v687_v16 = vld [vmem:[#allocation7 + $0x10] sm:$0xff]  ;;  %v720_v21 = vld [vmem:[#allocation7 + $0x118] sm:$0xff]  ;;  %v705_v23 = vld [vmem:[#allocation7 + $0xa0] sm:$0xff] }
  0x88   : > { %1197 = vmatpush1.bf16.msra.mxu1 %v1196_v20  ;;  %1167 = vmatprep.subr.bf16.mxu0 %v1166_v25  ;;  %v1212_v19 = vpack.c.bf16 %v688_v17, %v687_v16  ;;  %v719_v20 = vld [vmem:[#allocation7 + $0x110] sm:$0xff]  ;;  %v737_v25 = vld [vmem:[#allocation7 + $0x1a0] sm:$0xff]  ;;  %v690_v29 = vld [vmem:[#allocation7 + $0x28] sm:$0xff] }
  0x89   : > { %1199 = vmatprep.subr.bf16.mxu1 %v1198_v26  ;;  %v1244_v22 = vpack.c.bf16 %v720_v21, %v719_v20  ;;  %v689_v28 = vld [vmem:[#allocation7 + $0x20] sm:$0xff]  ;;  %v722_v33 = vld [vmem:[#allocation7 + $0x128] sm:$0xff]  ;;  %v743_v63 = vld [vmem:[#allocation7 + $0x1d0] sm:$0xff] }
  0x8a   : > { %v1216_v31 = vpack.c.bf16 %v690_v29, %v689_v28  ;;  %v721_v32 = vld [vmem:[#allocation7 + $0x120] sm:$0xff]  ;;  %v746_v13 = vld [vmem:[#allocation7 + $0x1e8] sm:$0xff]  ;;  %v715_v21 = vld [vmem:[#allocation7 + $0xf0] sm:$0xff] }
  0x8b   : > { %1169 = vmatpush1.bf16.msra.mxu0 %v1168_v30  ;;  %v1246_v30 = vpack.c.bf16 %v738_v27, %v737_v25  ;;  %v745_v11 = vld [vmem:[#allocation7 + $0x1e0] sm:$0xff]  ;;  %v698_v15 = vld [vmem:[#allocation7 + $0x68] sm:$0xff]  ;;  %v748_v25 = vld [vmem:[#allocation7 + $0x1f8] sm:$0xff] }
  0x8c   : > { %1201 = vmatpush1.bf16.msra.mxu1 %v1200_v34  ;;  %1171 = vmatprep.subr.bf16.mxu0 %v1170_v35  ;;  %v1248_v34 = vpack.c.bf16 %v722_v33, %v721_v32  ;;  %v707_v35 = vld [vmem:[#allocation7 + $0xb0] sm:$0xff]  ;;  %v1262_v16 = vpack.c.bf16 %v746_v13, %v745_v11  ;;  %v700_v27 = vld [vmem:[#allocation7 + $0x78] sm:$0xff]  ;;  %v455_v33 = vlaneseq }
  0xfb   : > { %v351_v38 = vpop.xlane.xlu0 %350 }
  0xfc   : > { %v355_v39 = vmul.f32 0.0078125, %v351_v38  ;;  %v445_v38 = vld [vmem:[#allocation5 + $0x1c0] sm:$0xff] }
  0xfe   : > { %v1836_v40 = vsub.f32 %v1829_v0, %v355_v39  ;;  %v1202_v39 = vpack.c.bf16 %v452_v37, %v448_v36  ;;  %v708_v36 = vld [vmem:[#allocation7 + $0xb8] sm:$0xff]  ;;  %v739_v37 = vld [vmem:[#allocation7 + $0x1b0] sm:$0xff] }
  0xff   : > { %v353_v41 = vpop.xlane.xlu0 %352 }
 0x100   : > { %v356_v42 = vmul.f32 0.0078125, %v353_v41  ;;  %v359_v43 = vmul.f32 %v1836_v40, %v1836_v40  ;;  %v449_v41 = vld [vmem:[#allocation5 + $0x1e0] sm:$0xff]  ;;  %1203 = vmatprep.subr.bf16.mxu1 %v1202_v39  ;;  %v740_v39 = vld [vmem:[#allocation7 + $0x1b8] sm:$0xff] }
 0x102   : > { %v1841_v44 = vsub.f32 %v1832_v1, %v356_v42  ;;  %361 = vadd.xlane.f32.xlu1 %v359_v43  ;;  %v447_v42 = vld [vmem:[#allocation5 + $0x1d0] sm:$0xff] }
 0x103   : > { %v451_v43 = vld [vmem:[#allocation5 + $0x1f0] sm:$0xff] }
 0x104   : > { %v360_v45 = vmul.f32 %v1841_v44, %v1841_v44  ;;  %v1204_v46 = vpack.c.bf16 %v451_v43, %v447_v42  ;;  %v692_v42 = vld [vmem:[#allocation7 + $0x38] sm:$0xff]  ;;  %v1250_v43 = vpack.c.bf16 %v740_v39, %v739_v37  ;;  %v453_v37 = vld [vmem:[%s1922_s4] sm:$0xf] }
 0x106   : > { %363 = vadd.xlane.f32.xlu1 %v360_v45  ;;  %v1172_v45 = vpack.c.bf16 %v449_v41, %v445_v38  ;;  %1205 = vmatpush1.bf16.msra.mxu1 %v1204_v46  ;;  %v1218_v38 = vpack.c.bf16 %v708_v36, %v707_v35  ;;  %v691_v41 = vld [vmem:[#allocation7 + $0x30] sm:$0xff] }
 0x107   : > { %v723_v46 = vld [vmem:[#allocation7 + $0x130] sm:$0xff] }
 0x108   : > { %1173 = vmatpush1.bf16.msra.mxu0 %v1172_v45  ;;  %v1220_v45 = vpack.c.bf16 %v692_v42, %v691_v41 }
 0x109   : > { %1207 = vmatprep.subr.bf16.mxu0 %v1206_v3  ;;  %v695_v3 = vld [vmem:[#allocation7 + $0x50] sm:$0xff] }
 0x18f   : > { %v362_v47 = vpop.xlane.xlu1 %361 }
 0x190   : > { %v365_v48 = vmul.f32 0.0078125, %v362_v47  ;;  %v724_v47 = vld [vmem:[#allocation7 + $0x138] sm:$0xff] }
 0x192   : > { %v367_v49 = vadd.f32 1e-05, %v365_v48  ;;  %v1252_v48 = vpack.c.bf16 %v724_v47, %v723_v46 }
 0x193   : > { %v364_v50 = vpop.xlane.xlu1 %363 }
 0x194   : > { %1360 = vrsqrt.f32 %v367_v49  ;;  %v366_v51 = vmul.f32 0.0078125, %v364_v50  ;;  %v709_v49 = vld [vmem:[#allocation7 + $0xc0] sm:$0xff]  ;;  %v710_v50 = vld [vmem:[#allocation7 + $0xc8] sm:$0xff] }
 0x196   : > { %v368_v52 = vadd.f32 1e-05, %v366_v51  ;;  %v741_v51 = vld [vmem:[#allocation7 + $0x1c0] sm:$0xff] }
 0x198   : > { %1362 = vrsqrt.f32 %v368_v52  ;;  %v1222_v52 = vpack.c.bf16 %v710_v50, %v709_v49 }
 0x19e   : > { %v1361_v53 = vpop.eup %1360 }
 0x19f   : > { %v371_v55 = vmul.f32 %v1361_v53, %v1836_v40  ;;  %v733_v40 = vld [vmem:[#allocation7 + $0x180] sm:$0xff]  ;;  %v742_v53 = vld [vmem:[#allocation7 + $0x1c8] sm:$0xff] }
 0x1a0   : > { %v1238_v7 = vpack.c.bf16 %v734_v4, %v733_v40  ;;  %v744_v40 = vld [vmem:[#allocation7 + $0x1d8] sm:$0xff] }
 0x1a1   : > { %v379_v57 = vmul.f32 %v1048_v54, %v371_v55  ;;  %v694_v55 = vld [vmem:[#allocation7 + $0x48] sm:$0xff]  ;;  %v696_v4 = vld [vmem:[#allocation7 + $0x58] sm:$0xff]  ;;  %v1258_v5 = vpack.c.bf16 %v744_v40, %v743_v63 }
 0x1a2   : > { %v1363_v58 = vpop.eup %1362  ;;  %1239 = vmatprep.subr.bf16.mxu1 %v1238_v7  ;;  %v1228_v6 = vpack.c.bf16 %v696_v4, %v695_v3  ;;  %v727_v7 = vld [vmem:[#allocation7 + $0x150] sm:$0xff] }
 0x1a3   : > { %v387_v59 = vadd.f32 %v1049_v56, %v379_v57  ;;  %v372_v60 = vmul.f32 %v1363_v58, %v1841_v44  ;;  %v1240_v44 = vpack.c.bf16 %v718_v10, %v717_v9  ;;  %v725_v58 = vld [vmem:[#allocation7 + $0x140] sm:$0xff] }
 0x1a4   : > { %v713_v10 = vld [vmem:[#allocation7 + $0xe0] sm:$0xff] }
 0x1a5   : > { %540 = vmatmul.mubr.f32.vlgmr.msra.gmra.mrb[0].mxu0 %v387_v59  ;;  %617 = vmatmul.mubr.f32.vlgmr.msra.gmra.mrb[0].mxu1 %v387_v59  ;;  %v380_v61 = vmul.f32 %v1048_v54, %v372_v60  ;;  %v693_v54 = vld [vmem:[#allocation7 + $0x40] sm:$0xff]  ;;  %v726_v59 = vld [vmem:[#allocation7 + $0x148] sm:$0xff] }
 0x1a6   : > { %545 = vmatprep.mubr.f32.mxu0 %v1577_v24  ;;  %622 = vmatprep.mubr.f32.mxu1 %v1577_v24  ;;  %v706_v24 = vld [vmem:[#allocation7 + $0xa8] sm:$0xff]  ;;  %v1224_v57 = vpack.c.bf16 %v694_v55, %v693_v54  ;;  %v1256_v60 = vpack.c.bf16 %v726_v59, %v725_v58 }
 0x1a7   : > { %v388_v62 = vadd.f32 %v1049_v56, %v380_v61  ;;  %1209 = vmatpush3.bf16.msra.mxu0 %v1208_v8  ;;  %1241 = vmatpush3.bf16.msra.mxu1 %v1240_v44  ;;  %v1214_v26 = vpack.c.bf16 %v706_v24, %v705_v23  ;;  %v1254_v56 = vpack.c.bf16 %v742_v53, %v741_v51  ;;  %v711_v61 = vld [vmem:[#allocation7 + $0xd0] sm:$0xff]  ;;  %v728_v8 = vld [vmem:[#allocation7 + $0x158] sm:$0xff]  ;;  %v714_v44 = vld [vmem:[#allocation7 + $0xe8] sm:$0xff] }
 0x1a8   : > { %1211 = vmatprep.subr.bf16.mxu0 %v1210_v14  ;;  %1243 = vmatprep.subr.bf16.mxu1 %v1242_v18  ;;  %v1260_v9 = vpack.c.bf16 %v728_v8, %v727_v7  ;;  %v1230_v12 = vpack.c.bf16 %v714_v44, %v713_v10  ;;  %v697_v14 = vld [vmem:[#allocation7 + $0x60] sm:$0xff]  ;;  %v747_v23 = vld [vmem:[#allocation7 + $0x1f0] sm:$0xff] }
 0x1a9   : > { %546 = vmatmul.mubr.f32.gmra.mrb[2].mxu0 %v388_v62  ;;  %623 = vmatmul.mubr.f32.gmra.mrb[2].mxu1 %v388_v62  ;;  %v712_v62 = vld [vmem:[#allocation7 + $0xd8] sm:$0xff]  ;;  %v1232_v17 = vpack.c.bf16 %v698_v15, %v697_v14  ;;  %v729_v18 = vld [vmem:[#allocation7 + $0x160] sm:$0xff]  ;;  %v1266_v28 = vpack.c.bf16 %v748_v25, %v747_v23 }
 0x1aa   : > { %v1226_v2 = vpack.c.bf16 %v712_v62, %v711_v61 }
 0x1ab   : > { %1213 = vmatpush3.bf16.msra.mxu0 %v1212_v19  ;;  %1245 = vmatpush3.bf16.msra.mxu1 %v1244_v22  ;;  %v730_v19 = vld [vmem:[#allocation7 + $0x168] sm:$0xff]  ;;  %v716_v22 = vld [vmem:[#allocation7 + $0xf8] sm:$0xff] }
 0x1ac   : > { %1215 = vmatprep.subr.bf16.mxu0 %v1214_v26  ;;  %1247 = vmatprep.subr.bf16.mxu1 %v1246_v30  ;;  %v1264_v20 = vpack.c.bf16 %v730_v19, %v729_v18  ;;  %v1234_v24 = vpack.c.bf16 %v716_v22, %v715_v21  ;;  %v699_v26 = vld [vmem:[#allocation7 + $0x70] sm:$0xff] }
 0x1ad   : > { %v1236_v29 = vpack.c.bf16 %v700_v27, %v699_v26  ;;  %v731_v30 = vld [vmem:[#allocation7 + $0x170] sm:$0xff] }
 0x1af   : > { %1217 = vmatpush3.bf16.msra.mxu0 %v1216_v31  ;;  %1249 = vmatpush3.bf16.msra.mxu1 %v1248_v34  ;;  %v732_v31 = vld [vmem:[#allocation7 + $0x178] sm:$0xff]  ;;  %v456_v34 = vshrl.u32 %v455_v33, 7 }
 0x1b0   : > { %1219 = vmatprep.subr.bf16.mxu0 %v1218_v38  ;;  %1251 = vmatprep.subr.bf16.mxu1 %v1250_v43  ;;  %v1268_v32 = vpack.c.bf16 %v732_v31, %v731_v30 }
 0x1b1   : > { %v457_v35 = vsub.s32 0, %v456_v34  ;;  %v465_v36 = vsub.s32 2, %v456_v34  ;;  %v461_v38 = vsub.s32 1, %v456_v34  ;;  %v469_v39 = vsub.s32 3, %v456_v34 }
 0x1b3   : > { %1221 = vmatpush3.bf16.msra.mxu0 %v1220_v45  ;;  %1253 = vmatpush3.bf16.msra.mxu1 %v1252_v48  ;;  %v458_v41 = vrot.slane %v453_v37, %v457_v35  ;;  %v466_v42 = vrot.slane %v453_v37, %v465_v36  ;;  %v462_v43 = vrot.slane %v453_v37, %v461_v38 }
 0x1b4   : > { %1223 = vmatprep.subr.bf16.mxu0 %v1222_v52  ;;  %1255 = vmatprep.subr.bf16.mxu1 %v1254_v56  ;;  %v470_v45 = vrot.slane %v453_v37, %v469_v39 }
 0x1b7   : > { %1225 = vmatpush3.bf16.msra.mxu0 %v1224_v57  ;;  %1257 = vmatpush3.bf16.msra.mxu1 %v1256_v60 }
 0x1b8   : > { %1227 = vmatprep.subr.bf16.mxu0 %v1226_v2  ;;  %1259 = vmatprep.subr.bf16.mxu1 %v1258_v5 }
 0x1bb   : > { %1229 = vmatpush3.bf16.msra.mxu0 %v1228_v6  ;;  %1261 = vmatpush3.bf16.msra.mxu1 %v1260_v9 }
 0x1bc   : > { %1231 = vmatprep.subr.bf16.mxu0 %v1230_v12  ;;  %1263 = vmatprep.subr.bf16.mxu1 %v1262_v16 }
 0x1bf   : > { %1233 = vmatpush3.bf16.msra.mxu0 %v1232_v17  ;;  %1265 = vmatpush3.bf16.msra.mxu1 %v1264_v20 }
 0x1c0   : > { %1235 = vmatprep.subr.bf16.mxu0 %v1234_v24  ;;  %1267 = vmatprep.subr.bf16.mxu1 %v1266_v28 }
 0x1c3   : > { %1237 = vmatpush3.bf16.msra.mxu0 %v1236_v29  ;;  %1269 = vmatpush3.bf16.msra.mxu1 %v1268_v32 }
 0x278   : > { %v541_v46 = vpop.f32.mrb[0].mxu0  ;;  %v618_v47 = vpop.f32.mrb[0].mxu1 }
 0x279   : > { %v542_v48 = vadd.f32 %v541_v46, %v458_v41  ;;  %v619_v49 = vadd.f32 %v618_v47, %v466_v42  ;;  %v543_v50 = vpop.f32.mrb[1].mxu0  ;;  %v620_v51 = vpop.f32.mrb[1].mxu1 }
 0x27a   : > { %v544_v52 = vadd.f32 %v543_v50, %v462_v43  ;;  %v621_v53 = vadd.f32 %v620_v51, %v470_v45 }
 0x27b   : > { %v1050_v54 = vmul.f32 -1.442695, %v542_v48  ;;  %v1052_v55 = vmul.f32 -1.442695, %v619_v49 }
 0x27c   : > { %v1051_v56 = vmul.f32 -1.442695, %v544_v52  ;;  %v1053_v57 = vmul.f32 -1.442695, %v621_v53  ;;  %v547_v58 = vpop.f32.mrb[2].mxu0  ;;  %v624_v59 = vpop.f32.mrb[2].mxu1 }
 0x27d   : > { %1364 = vpow2.f32 %v1050_v54  ;;  %v548_v60 = vadd.f32 %v547_v58, %v458_v41  ;;  %v625_v61 = vadd.f32 %v624_v59, %v466_v42  ;;  %v549_v62 = vpop.f32.mrb[3].mxu0  ;;  %v626_v63 = vpop.f32.mrb[3].mxu1  ;;  %v1058_v41 = vld [vmem:[%s1924_s6] ss:$0 sm:$0xff] }
 0x27e   : > { %1366 = vpow2.f32 %v1052_v55  ;;  %v550_v2 = vadd.f32 %v549_v62, %v462_v43  ;;  %v627_v40 = vadd.f32 %v626_v63, %v470_v45 }
 0x27f   : > { %1368 = vpow2.f32 %v1051_v56  ;;  %v1054_v3 = vmul.f32 -1.442695, %v548_v60  ;;  %v1056_v4 = vmul.f32 -1.442695, %v625_v61 }
 0x280   : > { %1370 = vpow2.f32 %v1053_v57  ;;  %v1055_v5 = vmul.f32 -1.442695, %v550_v2  ;;  %v1057_v6 = vmul.f32 -1.442695, %v627_v40 }
 0x281   : > { %1372 = vpow2.f32 %v1054_v3 }
 0x282   : > { %1374 = vpow2.f32 %v1056_v4 }
 0x283   : > { %1376 = vpow2.f32 %v1055_v5 }
 0x284   : > { %1378 = vpow2.f32 %v1057_v6 }
 0x287   : > { %v1365_v7 = vpop.eup %1364 }
 0x288   : > { %v1367_v8 = vpop.eup %1366  ;;  %v653_v9 = vadd.f32 1.0, %v1365_v7 }
 0x289   : > { %v1369_v10 = vpop.eup %1368  ;;  %v655_v44 = vadd.f32 1.0, %v1367_v8 }
 0x28a   : > { %v1371_v11 = vpop.eup %1370  ;;  %1380 = vrcp.f32 %v653_v9  ;;  %v654_v12 = vadd.f32 1.0, %v1369_v10 }
 0x28b   : > { %v1373_v13 = vpop.eup %1372  ;;  %1382 = vrcp.f32 %v655_v44  ;;  %v656_v14 = vadd.f32 1.0, %v1371_v11 }
 0x28c   : > { %v1375_v15 = vpop.eup %1374  ;;  %1384 = vrcp.f32 %v654_v12  ;;  %v657_v16 = vadd.f32 1.0, %v1373_v13 }
 0x28d   : > { %v1377_v17 = vpop.eup %1376  ;;  %1386 = vrcp.f32 %v656_v14  ;;  %v659_v18 = vadd.f32 1.0, %v1375_v15 }
 0x28e   : > { %v1379_v19 = vpop.eup %1378  ;;  %1388 = vrcp.f32 %v657_v16  ;;  %v658_v20 = vadd.f32 1.0, %v1377_v17 }
 0x28f   : > { %1390 = vrcp.f32 %v659_v18  ;;  %v660_v21 = vadd.f32 1.0, %v1379_v19 }
 0x290   : > { %1392 = vrcp.f32 %v658_v20 }
 0x291   : > { %1394 = vrcp.f32 %v660_v21 }
 0x294   : > { %v1381_v22 = vpop.eup %1380 }
 0x295   : > { %v1383_v23 = vpop.eup %1382  ;;  %v677_v28 = vmul.f32 %v1381_v22, %v542_v48 }
 0x296   : > { %v1385_v24 = vpop.eup %1384  ;;  %v679_v31 = vmul.f32 %v1383_v23, %v619_v49 }
 0x297   : > { %v1387_v25 = vpop.eup %1386  ;;  %v678_v26 = vmul.f32 %v1385_v24, %v544_v52 }
 0x298   : > { %v1389_v27 = vpop.eup %1388  ;;  %v680_v29 = vmul.f32 %v1387_v25, %v621_v53 }
 0x299   : > { %v1391_v30 = vpop.eup %1390  ;;  %820 = vmatprep.mubr.f32.mxu0 %v678_v26  ;;  %v681_v35 = vmul.f32 %v1389_v27, %v548_v60 }
 0x29a   : > { %v1393_v32 = vpop.eup %1392  ;;  %895 = vmatprep.mubr.f32.mxu1 %v680_v29  ;;  %821 = vmatmul.mubr.f32.vlgmr.msra.gmra.mrb[4].mxu0 %v677_v28  ;;  %v683_v37 = vmul.f32 %v1391_v30, %v625_v61 }
 0x29b   : > { %v1395_v33 = vpop.eup %1394  ;;  %v682_v34 = vmul.f32 %v1393_v32, %v550_v2  ;;  %896 = vmatmul.mubr.f32.vlgmr.msra.gmra.mrb[4].mxu1 %v679_v31 }
 0x29c   : > { %v684_v36 = vmul.f32 %v1395_v33, %v627_v40 }
 0x29d   : > { %825 = vmatprep.mubr.f32.mxu0 %v682_v34 }
 0x29e   : > { %900 = vmatprep.mubr.f32.mxu1 %v684_v36  ;;  %826 = vmatmul.mubr.f32.gmra.mrb[6].mxu0 %v681_v35 }
 0x29f   : > { %901 = vmatmul.mubr.f32.gmra.mrb[6].mxu1 %v683_v37 }
 0x36d   : > { %v1098_v38 = vpop.f32.mrb[4].mxu0 }
 0x36e   : > { %v1136_v39 = vpop.f32.mrb[4].mxu1  ;;  %v1099_v42 = vpop.f32.mrb[5].mxu0 }
 0x36f   : > { %v1100_v43 = vadd.f32 %v1099_v42, %v1098_v38  ;;  %v1137_v45 = vpop.f32.mrb[5].mxu1 }
 0x370   : > { %v1138_v46 = vadd.f32 %v1137_v45, %v1136_v39 }
 0x371   : > { %v823_v47 = vadd.f32 %v1100_v43, %v1058_v41  ;;  %v1101_v48 = vpop.f32.mrb[6].mxu0 }
 0x372   : > { %v1139_v49 = vpop.f32.mrb[6].mxu1  ;;  %v1102_v50 = vpop.f32.mrb[7].mxu0 }
 0x373   : > { %v898_v51 = vadd.f32 %v1138_v46, %v823_v47  ;;  %v1103_v52 = vadd.f32 %v1102_v50, %v1101_v48  ;;  %v1140_v53 = vpop.f32.mrb[7].mxu1 }
 0x374   : > { %v1141_v54 = vadd.f32 %v1140_v53, %v1139_v49 }
 0x375   : > { %v906_v55 = vmul.f32 0.5, %v898_v51  ;;  %v828_v56 = vadd.f32 %v1103_v52, %v1058_v41 }
 0x377   : > { %v908_v57 = vadd.f32 %v906_v55, %v1829_v0  ;;  %v903_v58 = vadd.f32 %v1141_v54, %v828_v56 }
 0x379   : > { %910 = vst [vmem:[%s343_s30] sm:$0xff] %v908_v57  ;;  %v907_v59 = vmul.f32 0.5, %v903_v58 }
 0x37b   : > { %v909_v60 = vadd.f32 %v907_v59, %v1832_v1 }
 0x37d   : > { %911 = vst [vmem:[%s343_s30 + $0x8] sm:$0xff] %v909_v60 }
 0x37e   : > { %1495 = shalt.err (!%p1492_p11)
}
 0x37f   : > { %s1496_s17 = scalar_lea.hbm %s1868_s9, 256  ;;  %s1500_s18 = scalar_lea.hbm %s1925_s7, 512 }
 0x380   : > { %p1497_p0 = scmp.ne.s32.totalorder %s1868_s9, %s1496_s17  ;;  %p1501_p6 = scmp.lt.u32.totalorder %s1868_s9, %s1925_s7 }
 0x381   : > { %p1502_p7 = scmp.lt.u32.totalorder %s1500_s18, %s1496_s17  ;;  %p1504_p8 = scmp.lt.u32.totalorder %s1496_s17, %s1868_s9 }
 0x382   : > { %p1498_p4 = pnand %p1497_p0, %p1946_p12 }
 0x383   : > { %p1503_p2 = por %p1502_p7, %p1501_p6 }
 0x384   : > { %p1499_p13 = pneg %p1498_p4 }
 0x385   : > { %p1505_p1 = por %p1504_p8, %p1503_p2 }
 0x387   : > { %p1506_p10 = pnand %p1505_p1, %p1499_p13 }
 0x389   : > { %1509 = shalt.err (!%p1506_p10)
}
 0x38a   : > { %s1579_s23 = smov 128   ;;  %s1580_s24 = smov 8  }
 0x38b   : > { %1280 = dma.vmem_to_hbm [thread:$0]  (%p1946_p12), %s1863_s15, 256, %s1868_s9, %s913_s10, %s1579_s23, %s1579_s23, %s1580_s24  }
 0x38c PF: > { %s1947_s11 = sld [smem:[#allocation12_spill]]  ;;  %s1948_s27 = sld [smem:[#allocation13_spill]] }
 0x38d   : > { %p1950_p5 = scmp.ge.s32.totalorder %s1568_s29, 2 }
 0x392   : > { %s943_s13 = sand.u32 1, %s1947_s11   ;;  %p1949_p3 = scmp.ne.s32.totalorder %s1948_s27, 0 }
 0x393   : > { %s944_s12 = scalar_lea.sflag [#allocation4], %s943_s13 }
 0x394   : > { %p1294_p9 = pnand %p1950_p5, %p1949_p3 }
 0x396   : > { %1543 = dma.done.wait (!%p1294_p9), %s944_s12, 256  }
 0x397   : > { %1545 = vsyncadd (!%p1294_p9), %s944_s12, 4294967040  ;;  %s24_s29 = sadd.s32 1, %s1568_s29   ;;  %s1951_s24 = smov %s1552_s25 }
 0x398   : > { %p21_p11 = scmp.ge.s32.totalorder %s24_s29, 4   ;;  %s1952_s25 = smov %s1556_s26 }
 0x399   : > { %s1953_s26 = smov %s1766_s8  ;;  %s1954_s27 = smov %s1564_s28 }
 0x39a   : > { %s1955_s28 = smov %s1957_s20  ;;  %23 = sbr.rel (!%p21_p11) target bundleno = 7 (0x7), region = 101 }
 0x3a1   :  { %949 = vsyncpa [#allocation3], 1 }
 0x3a2   :  { %951 = vsyncpa [#allocation3 + $0x1], 1 }
 0x3a3   :  { %952 = vsyncpa [#allocation6], 1 }
 0x3a4   :  { %953 = vsyncpa [#allocation4], 1 }
 0x3a5   :  { %955 = vsyncpa [#allocation4 + $0x1], 1 }

</bundles_post_ra>
